<compile_context>
chip_gen: v7x
topology: tpu7x:2x2x1
jax: 0.10.0
libtpu: 0.0.40
codegen_flags: <defaults>
</compile_context>

<pallas_src>
import jax
import jax.numpy as jnp
from jax.experimental import pallas as pl
from jax.experimental.pallas import tpu as pltpu


def _gcn_fused_kernel(feat_ref, edges_ref, w1_ref, b1_ref, w2_ref, b2_ref,
                      out_ref):
    """Adjacency build + both GCNConv layers fused in one invocation."""
    f32 = jnp.float32
    n = feat_ref.shape[0]
    e = edges_ref.shape[1]

    # ---- build normalized adjacency from edge_index (all on-chip) ---------
    edges = edges_ref[...]                                   # (2, E) int32
    src = edges[0:1, :]                                      # (1, E)
    dst = edges[1:2, :]                                      # (1, E)

    node_ids = jax.lax.broadcasted_iota(jnp.int32, (n, e), 0)      # (N, E)
    src_oh = (node_ids == src).astype(f32)                          # (N, E)
    dst_oh = (node_ids == dst).astype(f32)                          # (N, E)
    w_e = (src != dst).astype(f32)                                   # (1, E): drop existing self loops

    # adj[i, j] = #non-self edges (src=j -> dst=i); contraction over E (MXU).
    adj = jax.lax.dot_general(dst_oh, src_oh * w_e,
                              (((1,), (1,)), ((), ())),
                              preferred_element_type=f32)            # (N, N)
    eye = (jax.lax.broadcasted_iota(jnp.int32, (n, n), 0)
           == jax.lax.broadcasted_iota(jnp.int32, (n, n), 1)).astype(f32)
    adj = adj + eye                                                  # A_hat

    deg = jnp.sum(adj, axis=1, keepdims=True)                        # (N, 1) >= 1
    dis = jax.lax.rsqrt(deg)                                         # (N, 1)  D^{-1/2}

    # ---- layer 1: relu(A_norm @ (X @ W1) + b1) ----------------------------
    # A_norm @ Z == dis * (A_hat @ (dis * Z))  — avoids needing dis as a row.
    x = feat_ref[...]
    z1 = dis * jnp.dot(x, w1_ref[...], preferred_element_type=f32)   # (N, H)
    h = dis * jnp.dot(adj, z1, preferred_element_type=f32) + b1_ref[...]
    h = jnp.maximum(h, 0.0)                                          # ReLU
    # F.dropout(..., training=False): identity.

    # ---- layer 2: A_norm @ (H @ W2) + b2 -----------------------------------
    z2 = dis * jnp.dot(h, w2_ref[...], preferred_element_type=f32)   # (N, OUT)
    out_ref[...] = (dis * jnp.dot(adj, z2, preferred_element_type=f32)
                    + b2_ref[...])


def gcn_apply(feature, edge_index, params):
    """Single grid-less pallas_call: whole problem lives in VMEM."""
    n, emb = feature.shape
    hid = params["w1"].shape[1]
    out_dim = params["w2"].shape[1]
    e = edge_index.shape[1]

    flops = 2 * (e * n * n            # adjacency one-hot contraction
                 + n * emb * hid      # X @ W1
                 + n * n * hid        # A_hat @ Z1
                 + n * hid * out_dim  # H @ W2
                 + n * n * out_dim)   # A_hat @ Z2
    bytes_accessed = 4 * (n * emb + 2 * e + emb * hid + hid
                          + hid * out_dim + out_dim + n * out_dim)

    vmem = pl.BlockSpec(memory_space=pltpu.MemorySpace.VMEM)
    return pl.pallas_call(
        _gcn_fused_kernel,
        out_shape=jax.ShapeDtypeStruct((n, out_dim), jnp.float32),
        in_specs=[vmem] * 6,
        out_specs=vmem,
        cost_estimate=pl.CostEstimate(flops=int(flops),
                                      transcendentals=int(n),
                                      bytes_accessed=int(bytes_accessed)),
    )(feature, edge_index.astype(jnp.int32),
      params["w1"], params["b1"], params["w2"], params["b2"])


@jax.jit
def gcn_forward(feature, edge_index, edge_type, params):
    del edge_type  # unused by the reference forward()
    return gcn_apply(feature, edge_index, params)


def _reference_gcn(feature, edge_index, params):
    """Pure-JAX dense reference of the same GCN math (sanity check)."""
    n = feature.shape[0]
    src, dst = edge_index[0], edge_index[1]
    w = jnp.where(src != dst, 1.0, 0.0).astype(jnp.float32)
    adj = jnp.zeros((n, n), jnp.float32).at[dst, src].add(w)
    adj = adj + jnp.eye(n, dtype=jnp.float32)
    deg = jnp.sum(adj, axis=1)
    dis = jax.lax.rsqrt(deg)
    a_norm = adj * dis[:, None] * dis[None, :]
    h = jnp.maximum(a_norm @ (feature @ params["w1"]) + params["b1"], 0.0)
    return a_norm @ (h @ params["w2"]) + params["b2"]


def init_params(key, emb_dim=16, hidden_dim=128, out_dim=3):
    ks = jax.random.split(key, 4)
    s = 0.1
    return {
        "w1": s * jax.random.normal(ks[0], (emb_dim, hidden_dim), jnp.float32),
        "b1": s * jax.random.normal(ks[1], (1, hidden_dim), jnp.float32),
        "w2": s * jax.random.normal(ks[2], (hidden_dim, out_dim), jnp.float32),
        "b2": s * jax.random.normal(ks[3], (1, out_dim), jnp.float32),
    }


if __name__ == "__main__":
    key = jax.random.PRNGKey(0)
    k_feat, k_src, k_dst, k_type, k_param = jax.random.split(key, 5)

    N = 16        # number of nodes
    EMB = 16      # embedding_dimension
    HIDDEN = 128  # hidden_dimension
    OUT = 3       # out_dim
    E = 40        # number of edges

    feature = jax.random.normal(k_feat, (N, EMB), jnp.float32)
    src = jax.random.randint(k_src, (E,), 0, N)
    dst = jax.random.randint(k_dst, (E,), 0, N)
    edge_index = jnp.stack([src, dst], axis=0).astype(jnp.int32)   # (2, E)
    edge_type = jax.random.randint(k_type, (E,), 0, 2)             # unused

    params = init_params(k_param, EMB, HIDDEN, OUT)

    out = gcn_forward(feature, edge_index, edge_type, params)
    out = jax.block_until_ready(out)
    assert out.shape == (N, OUT), out.shape

    # Correctness check against the pure-JAX dense reference.
    ref = _reference_gcn(feature, edge_index, params)
    err = float(jnp.max(jnp.abs(out - ref)))
    assert jnp.allclose(out, ref, atol=1e-4, rtol=1e-4), err

    print("KERNEL_OK")
</pallas_src>

<mosaic_0001>
module attributes {stable_mosaic.version = 11 : i64} {
  func.func @_gcn_fused_kernel(%arg0: memref<16x16xf32, #tpu.memory_space<vmem>>, %arg1: memref<2x40xi32, #tpu.memory_space<vmem>>, %arg2: memref<16x128xf32, #tpu.memory_space<vmem>>, %arg3: memref<1x128xf32, #tpu.memory_space<vmem>>, %arg4: memref<128x3xf32, #tpu.memory_space<vmem>>, %arg5: memref<1x3xf32, #tpu.memory_space<vmem>>, %arg6: memref<16x3xf32, #tpu.memory_space<vmem>>) attributes {dimension_semantics = [], scalar_prefetch = 0 : i64, scratch_operands = 0 : i64, tpu.core_type = #tpu.core_type<tc>} {
    %c0 = arith.constant 0 : index
    %c0_0 = arith.constant 0 : index
    %0 = vector.load %arg1[%c0, %c0_0] : memref<2x40xi32, #tpu.memory_space<vmem>>, vector<2x40xi32>
    %1 = vector.extract_strided_slice %0 {offsets = [0, 0], sizes = [1, 40], strides = [1, 1]} : vector<2x40xi32> to vector<1x40xi32>
    %2 = vector.extract_strided_slice %0 {offsets = [1, 0], sizes = [1, 40], strides = [1, 1]} : vector<2x40xi32> to vector<1x40xi32>
    %3 = tpu.iota {dimensions = array<i32: 0>} : vector<16x40xi32>
    %4 = vector.broadcast %1 : vector<1x40xi32> to vector<16x40xi32>
    %5 = arith.cmpi eq, %3, %4 : vector<16x40xi32>
    %6 = arith.extui %5 : vector<16x40xi1> to vector<16x40xi32>
    %7 = arith.sitofp %6 : vector<16x40xi32> to vector<16x40xf32>
    %8 = vector.broadcast %2 : vector<1x40xi32> to vector<16x40xi32>
    %9 = arith.cmpi eq, %3, %8 : vector<16x40xi32>
    %10 = arith.extui %9 : vector<16x40xi1> to vector<16x40xi32>
    %11 = arith.sitofp %10 : vector<16x40xi32> to vector<16x40xf32>
    %12 = arith.cmpi ne, %1, %2 : vector<1x40xi32>
    %13 = arith.extui %12 : vector<1x40xi1> to vector<1x40xi32>
    %14 = arith.sitofp %13 : vector<1x40xi32> to vector<1x40xf32>
    %15 = vector.broadcast %14 : vector<1x40xf32> to vector<16x40xf32>
    %16 = arith.mulf %7, %15 : vector<16x40xf32>
    %cst = arith.constant dense<0.000000e+00> : vector<16x16xf32>
    %17 = tpu.matmul %11, %16, %cst {dimension_numbers = #tpu.dot_dimension_numbers<[1], [1], [0], [0], [0, 0, 1, 0], [], []>} : vector<16x40xf32>, vector<16x40xf32>, vector<16x16xf32> -> vector<16x16xf32>
    %18 = tpu.iota {dimensions = array<i32: 0>} : vector<16x16xi32>
    %19 = tpu.iota {dimensions = array<i32: 1>} : vector<16x16xi32>
    %20 = arith.cmpi eq, %18, %19 : vector<16x16xi32>
    %21 = arith.extui %20 : vector<16x16xi1> to vector<16x16xi32>
    %22 = arith.sitofp %21 : vector<16x16xi32> to vector<16x16xf32>
    %23 = arith.addf %17, %22 : vector<16x16xf32>
    %cst_1 = arith.constant dense<0.000000e+00> : vector<16xf32>
    %24 = vector.multi_reduction <add>, %23, %cst_1 [1] : vector<16x16xf32> to vector<16xf32>
    %25 = vector.shape_cast %24 : vector<16xf32> to vector<16x1xf32>
    %26 = math.rsqrt %25 : vector<16x1xf32>
    %c0_2 = arith.constant 0 : index
    %c0_3 = arith.constant 0 : index
    %27 = vector.load %arg0[%c0_2, %c0_3] : memref<16x16xf32, #tpu.memory_space<vmem>>, vector<16x16xf32>
    %c0_4 = arith.constant 0 : index
    %c0_5 = arith.constant 0 : index
    %28 = vector.load %arg2[%c0_4, %c0_5] : memref<16x128xf32, #tpu.memory_space<vmem>>, vector<16x128xf32>
    %cst_6 = arith.constant dense<0.000000e+00> : vector<16x128xf32>
    %29 = tpu.matmul %27, %28, %cst_6 {dimension_numbers = #tpu.dot_dimension_numbers<[1], [0], [0], [1], [0, 0, 1, 1], [], []>} : vector<16x16xf32>, vector<16x128xf32>, vector<16x128xf32> -> vector<16x128xf32>
    %30 = vector.broadcast %26 : vector<16x1xf32> to vector<16x128xf32>
    %31 = arith.mulf %30, %29 : vector<16x128xf32>
    %cst_7 = arith.constant dense<0.000000e+00> : vector<16x128xf32>
    %32 = tpu.matmul %23, %31, %cst_7 {dimension_numbers = #tpu.dot_dimension_numbers<[1], [0], [0], [1], [0, 0, 1, 1], [], []>} : vector<16x16xf32>, vector<16x128xf32>, vector<16x128xf32> -> vector<16x128xf32>
    %33 = vector.broadcast %26 : vector<16x1xf32> to vector<16x128xf32>
    %34 = arith.mulf %33, %32 : vector<16x128xf32>
    %c0_8 = arith.constant 0 : index
    %c0_9 = arith.constant 0 : index
    %35 = vector.load %arg3[%c0_8, %c0_9] : memref<1x128xf32, #tpu.memory_space<vmem>>, vector<1x128xf32>
    %36 = vector.broadcast %35 : vector<1x128xf32> to vector<16x128xf32>
    %37 = arith.addf %34, %36 : vector<16x128xf32>
    %cst_10 = arith.constant 0.000000e+00 : f32
    %38 = vector.broadcast %cst_10 : f32 to vector<16x128xf32>
    %39 = arith.maximumf %37, %38 : vector<16x128xf32>
    %c0_11 = arith.constant 0 : index
    %c0_12 = arith.constant 0 : index
    %40 = vector.load %arg4[%c0_11, %c0_12] : memref<128x3xf32, #tpu.memory_space<vmem>>, vector<128x3xf32>
    %cst_13 = arith.constant dense<0.000000e+00> : vector<16x3xf32>
    %41 = tpu.matmul %39, %40, %cst_13 {dimension_numbers = #tpu.dot_dimension_numbers<[1], [0], [0], [1], [0, 0, 1, 1], [], []>} : vector<16x128xf32>, vector<128x3xf32>, vector<16x3xf32> -> vector<16x3xf32>
    %42 = vector.broadcast %26 : vector<16x1xf32> to vector<16x3xf32>
    %43 = arith.mulf %42, %41 : vector<16x3xf32>
    %cst_14 = arith.constant dense<0.000000e+00> : vector<16x3xf32>
    %44 = tpu.matmul %23, %43, %cst_14 {dimension_numbers = #tpu.dot_dimension_numbers<[1], [0], [0], [1], [0, 0, 1, 1], [], []>} : vector<16x16xf32>, vector<16x3xf32>, vector<16x3xf32> -> vector<16x3xf32>
    %45 = vector.broadcast %26 : vector<16x1xf32> to vector<16x3xf32>
    %46 = arith.mulf %45, %44 : vector<16x3xf32>
    %c0_15 = arith.constant 0 : index
    %c0_16 = arith.constant 0 : index
    %47 = vector.load %arg5[%c0_15, %c0_16] : memref<1x3xf32, #tpu.memory_space<vmem>>, vector<1x3xf32>
    %48 = vector.broadcast %47 : vector<1x3xf32> to vector<16x3xf32>
    %49 = arith.addf %46, %48 : vector<16x3xf32>
    %c0_17 = arith.constant 0 : index
    %c0_18 = arith.constant 0 : index
    %50 = vector.load %arg6[%c0_17, %c0_18] : memref<16x3xf32, #tpu.memory_space<vmem>>, vector<16x3xf32>
    tpu.vector_store %arg6[%c0_17, %c0_18], %49 {strides = array<i32>} : memref<16x3xf32, #tpu.memory_space<vmem>>, vector<16x3xf32>,
    return
  }
}

</mosaic_0001>

<bundles_post_ra>
// kernel: gcn_forward.1
= control target key start
LH: loop header
LB: loop body
LE: loop exit
PB: predicated region body
PF: predicated region fallthrough
CT: control target
= control target key end

     0   :  { %v24_v0 = vlaneseq  ;;  %v700_v8 = vmov 0.0   ;;  %vm65_vm4 = vcmask 326656   ;;  %vm153_vm8 = vcmask 130048   ;;  %s829_s1 = inlined_call_operand.vmem [shape: s32[2,40], index: 1, kind: input, shape index: {}]   ;;  %s830_s2 = inlined_call_operand.vmem [shape: f32[16,128], index: 2, kind: input, shape index: {}]   ;;  %s831_s0 = inlined_call_operand.vmem [shape: f32[16,16], index: 0, kind: input, shape index: {}]   ;;  %s832_s4 = inlined_call_operand.vmem [shape: f32[128,3], index: 4, kind: input, shape index: {}]   ;;  %s833_s3 = inlined_call_operand.vmem [shape: f32[1,128], index: 3, kind: input, shape index: {}]   ;;  %s834_s5 = inlined_call_operand.vmem [shape: f32[1,3], index: 5, kind: input, shape index: {}]   ;;  %s835_s6 = inlined_call_operand.vmem [shape: f32[16,3], index: 6, kind: output, shape index: {}]  }
   0x1   :  { %v23_v1 = vld [vmem:[%s829_s1] sm:$0x3]  ;;  %v165_v17 = vld [vmem:[%s830_s2 + $0x8] sm:$0xff]  ;;  %vm646_vm6 = vmpackc.low %vm65_vm4, %vm65_vm4  ;;  %vm522_vm10 = vcmask 23552  }
   0x2   :  { %v25_v2 = vshrl.u32 %v24_v0, 7  ;;  %v47_v3 = vrot.slane %v23_v1, 1  ;;  %v58_v4 = vand.u32 127, %v24_v0  ;;  %v164_v16 = vld [vmem:[%s830_s2] sm:$0xff]  ;;  %v163_v24 = vld [vmem:[%s831_s0 + $0x8] sm:$0xff]  ;;  %v345_v37 = vld [vmem:[%s832_s4 + $0x10] sm:$0xff] }
   0x3   :  { %v651_v21 = vpack.c.bf16 %v165_v17, %v164_v16  ;;  %v162_v23 = vld [vmem:[%s831_s0] sm:$0xff]  ;;  %v344_v36 = vld [vmem:[%s832_s4 + $0x8] sm:$0xff]  ;;  %v346_v39 = vld [vmem:[%s832_s4 + $0x18] sm:$0xff] }
   0x4   :  { %v26_v5 = vadd.s32 8, %v25_v2  ;;  %v29_v6 = vsub.s32 0, %v25_v2  ;;  %vm48_vm0 = vcmp.ne.s32.totalorder %v23_v1, %v47_v3  ;;  %v39_v7 = vsub.s32 1, %v25_v2  ;;  %v343_v35 = vld [vmem:[%s832_s4] sm:$0xff]  ;;  %v348_v42 = vld [vmem:[%s832_s4 + $0x28] sm:$0xff]  ;;  %v349_v44 = vld [vmem:[%s832_s4 + $0x30] sm:$0xff] }
   0x5   :  { %v533_v9 = vsel %vm48_vm0, 1.0, %v700_v8  ;;  %vm59_vm9 = vcmp.eq.s32.totalorder %v25_v2, %v58_v4  ;;  %v659_v38 = vpack.c.bf16 %v344_v36, %v343_v35  ;;  %v663_v40 = vpack.c.bf16 %v346_v39, %v345_v37  ;;  %v347_v41 = vld [vmem:[%s832_s4 + $0x20] sm:$0xff]  ;;  %v350_v45 = vld [vmem:[%s832_s4 + $0x38] sm:$0xff]  ;;  %v352_v48 = vld [vmem:[%s832_s4 + $0x48] sm:$0xff] }
   0x6   :  { %v30_v10 = vrot.slane %v23_v1, %v29_v6  ;;  %v54_v11 = vrot.slane %v533_v9, %v29_v6  ;;  %v40_v12 = vrot.slane %v23_v1, %v39_v7  ;;  %vm60_vm1 = vcmp.eq.s32.totalorder %v26_v5, %v58_v4  ;;  %v351_v47 = vld [vmem:[%s832_s4 + $0x40] sm:$0xff]  ;;  %v353_v50 = vld [vmem:[%s832_s4 + $0x50] sm:$0xff]  ;;  %v354_v51 = vld [vmem:[%s832_s4 + $0x58] sm:$0xff] }
   0x7   :  { %v535_v25 = vsel %vm60_vm1, 1.0, %v700_v8  ;;  %v534_v26 = vsel %vm59_vm9, 1.0, %v700_v8  ;;  %660 = vmatprep.subr.bf16.mxu0 %v659_v38  ;;  %v667_v43 = vpack.c.bf16 %v348_v42, %v347_v41  ;;  %v671_v46 = vpack.c.bf16 %v350_v45, %v349_v44  ;;  %v355_v60 = vld [vmem:[%s832_s4 + $0x60] sm:$0xff]  ;;  %v356_v61 = vld [vmem:[%s832_s4 + $0x68] sm:$0xff]  ;;  %v357_v63 = vld [vmem:[%s832_s4 + $0x70] sm:$0xff] }
   0x8   :  { %vm31_vm2 = vcmp.eq.s32.totalorder %v25_v2, %v30_v10  ;;  %vm32_vm3 = vcmp.eq.s32.totalorder %v26_v5, %v30_v10  ;;  %vm41_vm5 = vcmp.eq.s32.totalorder %v25_v2, %v40_v12  ;;  %vm42_vm7 = vcmp.eq.s32.totalorder %v26_v5, %v40_v12  ;;  %662 = vmatpush3.bf16.msra.mxu0 %v659_v38  ;;  %v358_v0 = vld [vmem:[%s832_s4 + $0x78] sm:$0xff]  ;;  %v544_v3 = vld [vmem:[%s833_s3] ss:$0 sm:$0xff] }
   0x9   :  { %v529_v13 = vsel %vm31_vm2, 1.0, %v700_v8  ;;  %v530_v14 = vsel %vm32_vm3, 1.0, %v700_v8  ;;  %v531_v15 = vsel %vm41_vm5, 1.0, %v700_v8  ;;  %v532_v22 = vsel %vm42_vm7, 1.0, %v700_v8  ;;  %664 = vmatprep.subr.bf16.mxu0 %v663_v40  ;;  %v547_v17 = vld [vmem:[%s834_s5] ss:$0 sm:$0xff] }
   0xa   :  { %v55_v18 = vmul.f32 %v529_v13, %v54_v11  ;;  %v56_v19 = vmul.f32 %v530_v14, %v54_v11  ;;  %586 = vmatprep.mubr.msk.f32.mxu1 %vm65_vm4, %v531_v15  ;;  %v675_v49 = vpack.c.bf16 %v352_v48, %v351_v47  ;;  %v679_v52 = vpack.c.bf16 %v354_v51, %v353_v50 }
   0xb   :  { %v683_v62 = vpack.c.bf16 %v356_v61, %v355_v60  ;;  %v687_v1 = vpack.c.bf16 %v358_v0, %v357_v63 }
   0xc   :  { %v645_v20 = vpack.c.bf16 %v56_v19, %v55_v18  ;;  %666 = vmatpush3.bf16.msra.mxu0 %v663_v40 }
   0xd   :  { %668 = vmatprep.subr.bf16.mxu0 %v667_v43 }
   0xe   :  { %647 = vmatprep.subr.msk.bf16.mxu1 %vm646_vm6, %v645_v20 }
   0xf   :  { %650 = vmatpush3.bf16.xpose.msk.msra.mxu1 %vm646_vm6, %v645_v20 }
  0x10   :  { %652 = vmatprep.subr.bf16.mxu1 %v651_v21  ;;  %670 = vmatpush3.bf16.msra.mxu0 %v667_v43 }
  0x11   :  { %672 = vmatprep.subr.bf16.mxu0 %v671_v46 }
  0x14   :  { %674 = vmatpush3.bf16.msra.mxu0 %v671_v46 }
  0x15   :  { %676 = vmatprep.subr.bf16.mxu0 %v675_v49 }
  0x16   :  { %587 = vmatmul.mubr.msk.f32.vlgmr.msra.gmra.mrb[0].mxu1 %vm65_vm4, %v532_v22 }
  0x17   :  { %654 = vmatpush3.bf16.msra.mxu1 %v651_v21  ;;  %593 = vmatprep.mubr.msk.f32.mxu1 %vm153_vm8, %v162_v23 }
  0x18   :  { %678 = vmatpush3.bf16.msra.mxu0 %v675_v49 }
  0x19   :  { %680 = vmatprep.subr.bf16.mxu0 %v679_v52 }
  0x1a   :  { %594 = vmatmul.mubr.msk.f32.vlgmr.msra.gmra.mrb[2].mxu1 %vm153_vm8, %v163_v24 }
  0x1c   :  { %682 = vmatpush3.bf16.msra.mxu0 %v679_v52 }
  0x1d   :  { %684 = vmatprep.subr.bf16.mxu0 %v683_v62 }
  0x20   :  { %686 = vmatpush3.bf16.msra.mxu0 %v683_v62 }
  0x21   :  { %688 = vmatprep.subr.bf16.mxu0 %v687_v1 }
  0x24   :  { %690 = vmatpush3.bf16.msra.mxu0 %v687_v1 }
  0xe9   :  { %v588_v27 = vpop.f32.mrb[0].mxu1 }
  0xea   :  { %v758_v28 = vadd.f32 %v588_v27, %v535_v25  ;;  %v144_v29 = vpop.f32.mrb[1].mxu1 }
  0xeb   :  { %v145_v30 = vadd.f32 %v534_v26, %v144_v29 }
  0xec   :  { %v157_v32 = vsel %vm153_vm8, %v758_v28, 0.0 }
  0xed   :  { %600 = vmatprep.mubr.msk.f32.mxu1 %vm153_vm8, %v145_v30  ;;  %v154_v31 = vsel %vm153_vm8, %v145_v30, 0.0  ;;  %v595_v33 = vpop.f32.mrb[2].mxu1 }
  0xee   :  { %155 = vadd.xlane.f32.xlu0 %v154_v31  ;;  %v238_v34 = vpop.f32.mrb[3].mxu1 }
  0xf2   :  { %158 = vadd.xlane.f32.xlu0 %v157_v32 }
 0x17b   :  { %v156_v53 = vpop.xlane.xlu0 %155 }
 0x17c   :  { %696 = vrsqrt.f32 %v156_v53 }
 0x17f   :  { %v159_v54 = vpop.xlane.xlu0 %158 }
 0x180   :  { %698 = vrsqrt.f32 %v159_v54 }
 0x186   :  { %v697_v55 = vpop.eup %696 }
 0x187   :  { %v247_v58 = vmul.f32 %v697_v55, %v238_v34 }
 0x18a   :  { %v699_v56 = vpop.eup %698 }
 0x18b   :  { %v248_v57 = vmul.f32 %v699_v56, %v595_v33 }
 0x18d   :  { %v655_v59 = vpack.c.bf16 %v248_v57, %v247_v58 }
 0x18f   :  { %656 = vmatprep.subr.bf16.mxu1 %v655_v59 }
 0x190   :  { %658 = vmatpush3.bf16.msra.mxu1 %v655_v59 }
 0x193   :  { %601 = vmatmul.mubr.msk.f32.vlgmr.msra.gmra.mrb[4].mxu1 %vm153_vm8, %v758_v28 }
 0x194   :  { %642 = vmatprep.mubr.msk.f32.mxu1 %vm153_vm8, %v145_v30 }
 0x266   :  { %v602_v2 = vpop.f32.mrb[4].mxu1 }
 0x267   :  { %v331_v4 = vmul.f32 %v699_v56, %v602_v2  ;;  %v321_v5 = vpop.f32.mrb[5].mxu1 }
 0x268   :  { %v330_v6 = vmul.f32 %v697_v55, %v321_v5 }
 0x269   :  { %v340_v7 = vadd.f32 %v544_v3, %v331_v4 }
 0x26a   :  { %v339_v8 = vadd.f32 %v544_v3, %v330_v6 }
 0x26b   :  { %v342_v10 = vmax.f32 %v340_v7, 0.0 }
 0x26c   :  { %v341_v9 = vmax.f32 %v339_v8, 0.0 }
 0x26e   :  { %635 = vmatprep.mubr.f32.mxu0 %v341_v9 }
 0x26f   :  { %636 = vmatmul.mubr.f32.vlgmr.msra.gmra.mrb[0].mxu0 %v342_v10 }
 0x342   :  { %v637_v11 = vpop.f32.mrb[0].mxu0 }
 0x343   :  { %v435_v12 = vmul.f32 %v699_v56, %v637_v11  ;;  %v425_v13 = vpop.f32.mrb[1].mxu0 }
 0x344   :  { %v434_v14 = vmul.f32 %v697_v55, %v425_v13 }
 0x346   :  { %v691_v15 = vpack.c.bf16 %v435_v12, %v434_v14 }
 0x348   :  { %692 = vmatprep.subr.bf16.mxu1 %v691_v15 }
 0x349   :  { %694 = vmatpush3.bf16.msra.mxu1 %v691_v15 }
 0x34c   :  { %643 = vmatmul.mubr.msk.f32.vlgmr.msra.gmra.mrb[6].mxu1 %vm153_vm8, %v758_v28 }
 0x41f   :  { %v644_v16 = vpop.f32.mrb[6].mxu1 }
 0x420   :  { %v512_v18 = vmul.f32 %v699_v56, %v644_v16  ;;  %v502_v19 = vpop.f32.mrb[7].mxu1 }
 0x421   :  { %v511_v20 = vmul.f32 %v697_v55, %v502_v19 }
 0x422   :  { %v521_v21 = vadd.f32 %v547_v17, %v512_v18 }
 0x423   :  { %v520_v22 = vadd.f32 %v547_v17, %v511_v20 }
 0x424   :  { %524 = vst.msk [vmem:[%s835_s6 + $0x8] sm:$0xff] %vm522_vm10, %v521_v21 }
 0x425   :  { %523 = vst.msk [vmem:[%s835_s6] sm:$0xff] %vm522_vm10, %v520_v22 }

</bundles_post_ra>
